<compile_context>
chip_gen: v7x
topology: tpu7x:2x2x1
jax: 0.10.0
libtpu: 0.0.40
codegen_flags: <defaults>
</compile_context>

<pallas_src>
import functools

import numpy as np
import jax
import jax.numpy as jnp
from jax.experimental import pallas as pl
from jax.experimental.pallas import tpu as pltpu

# Hidden sizes from the module definition.
H1_SIZE = H22_SIZE = 25
H2_SIZE = H11_SIZE = 20
H3_SIZE = 10

ELU_ALPHA = 0.5
NUM_LAYERS = 6

LANES = 128      # hidden/output feature dims padded to the full lane width
BIAS_ROWS = 8    # bias slab sublane-padded to 8 rows (6 used)


def _elu(v, alpha=ELU_ALPHA):
    # torch.nn.ELU(alpha=0.5): x if x > 0 else alpha * (exp(x) - 1).
    # exp argument clamped at 0 so the not-selected branch never overflows;
    # exp(v)-1 (instead of expm1) keeps guaranteed Mosaic lowering, error < 1e-7.
    return jnp.where(v > 0, v, alpha * (jnp.exp(jnp.minimum(v, 0.0)) - 1.0))


def mlp_kernel(x_ref, w_ref, b_ref, o_ref, *, in_features):
    """Whole 6-layer MLP forward on one [tile, in_features] batch block.

    x_ref : [tile, in_features]  unpadded input block (f32)
    w_ref : [6, 128, 128]        weight slab (f32 or bf16), VMEM resident
    b_ref : [8, 128]             f32 bias slab (rows 0..5 used)
    o_ref : [tile, 128]          lane-padded f32 output (real features in
                                 lanes [0, out_features))
    """
    mxu_dtype = w_ref.dtype

    h = x_ref[...].astype(jnp.float32)
    # Layer 1: contract only over the real in_features rows of the first tile.
    h = jnp.dot(h.astype(mxu_dtype), w_ref[0, :in_features, :],
                preferred_element_type=jnp.float32)
    h = h + b_ref[0, :].reshape(1, LANES)
    h = _elu(h)

    for i in range(1, NUM_LAYERS):  # static unroll: 5 dependent 128x128 matmuls
        h = jnp.dot(h.astype(mxu_dtype), w_ref[i],
                    preferred_element_type=jnp.float32)
        h = h + b_ref[i, :].reshape(1, LANES)
        if i < NUM_LAYERS - 1:
            h = _elu(h)

    o_ref[...] = h.astype(o_ref.dtype)


def pack_params(params, *, weight_dtype=jnp.float32):
    """params: list of (W_t [in, out], b [out]) pairs per layer, forward order.

    Packed ONCE at init (numpy, then one upload each):
      w_slab[i, :fin, :fout] = W_t_i   (zeros elsewhere)
      b_slab[i, :fout]       = b_i     (zeros elsewhere, 8 sublane rows)
    Zero padding keeps all padded lanes exactly 0 through the whole chain.
    """
    w = np.zeros((NUM_LAYERS, LANES, LANES), np.float32)
    b = np.zeros((BIAS_ROWS, LANES), np.float32)
    assert len(params) == NUM_LAYERS
    for i, (wi, bi) in enumerate(params):
        fin, fout = wi.shape
        assert fin <= LANES and fout <= LANES
        w[i, :fin, :fout] = np.asarray(wi, np.float32)
        b[i, :fout] = np.asarray(bi, np.float32).reshape(-1)
    return jnp.asarray(w, weight_dtype), jnp.asarray(b, jnp.float32)


def _round_up(n, m):
    return ((n + m - 1) // m) * m


def _cdiv(a, b):
    return (a + b - 1) // b


def _pick_tile(batch, batch_tile):
    pb0 = _round_up(batch, 8)
    tile = min(batch_tile, pb0)
    # Ensure >= 2 grid steps whenever possible so the "parallel" batch axis can
    # shard across v7x's two TensorCores (v5e/v6e just see a short loop).
    if pb0 > 8 and _cdiv(pb0, tile) < 2:
        tile = _round_up(_cdiv(pb0, 2), 8)
    pb = _round_up(batch, tile)
    return pb, tile


def _forward_impl(x, w_slab, b_slab, *, in_features, out_features, batch_tile):
    batch = x.shape[0]
    assert x.shape[1] == in_features
    pb, tile = _pick_tile(batch, batch_tile)

    x_p = x.astype(jnp.float32)
    if pb != batch:
        x_p = jnp.pad(x_p, ((0, pb - batch), (0, 0)))

    kernel = functools.partial(mlp_kernel, in_features=in_features)

    w_bytes = w_slab.size * w_slab.dtype.itemsize
    b_bytes = b_slab.size * 4

    # Advisory cost so XLA schedules the surrounding pad/slice ops sensibly.
    flops = 2 * pb * (in_features * LANES + (NUM_LAYERS - 1) * LANES * LANES)
    transcendentals = (NUM_LAYERS - 1) * pb * LANES
    bytes_accessed = pb * in_features * 4 + pb * LANES * 4 + w_bytes + b_bytes

    # Double-buffered in/out + resident slab; only override the scoped-VMEM
    # default when a caller requests tiles large enough to need it (v5e: 16 MiB).
    vmem_est = (2 * tile * in_features * 4 + 2 * tile * LANES * 4
                + 2 * w_bytes + b_bytes + (1 << 20))
    vmem_limit = int(vmem_est) if vmem_est > (16 << 20) else None

    out_padded = pl.pallas_call(
        kernel,
        out_shape=jax.ShapeDtypeStruct((pb, LANES), jnp.float32),
        grid=(pb // tile,),
        in_specs=[
            # x tile streams over the batch grid (double-buffered), unpadded lanes.
            pl.BlockSpec((tile, in_features), lambda i: (i, 0)),
            # Whole weight slab, constant block index -> stays VMEM resident.
            pl.BlockSpec((NUM_LAYERS, LANES, LANES), lambda i: (0, 0, 0)),
            # Tiny bias slab, also resident.
            pl.BlockSpec((BIAS_ROWS, LANES), lambda i: (0, 0)),
        ],
        out_specs=pl.BlockSpec((tile, LANES), lambda i: (i, 0)),
        compiler_params=pltpu.CompilerParams(
            dimension_semantics=("parallel",),
            vmem_limit_bytes=vmem_limit),
        cost_estimate=pl.CostEstimate(
            flops=flops,
            transcendentals=transcendentals,
            bytes_accessed=bytes_accessed),
    )(x_p, w_slab, b_slab)

    return out_padded[:batch, :out_features].astype(x.dtype)


def build_mlp_forward(params, *, batch_tile=2048, use_bf16=False):
    """Pack the weights once and return a jitted forward(x) callable.

    params: list of 6 (W_t [in, out], b [out]) pairs (PyTorch weights transposed).
    use_bf16: store weights / drive the MXU in bf16 (f32 accumulate, f32 ELU).
              Expect ~1e-2 relative error vs the f32 path.
    """
    in_features = params[0][0].shape[0]
    out_features = params[-1][0].shape[1]
    weight_dtype = jnp.bfloat16 if use_bf16 else jnp.float32
    w_slab, b_slab = pack_params(params, weight_dtype=weight_dtype)

    impl = jax.jit(functools.partial(
        _forward_impl, in_features=in_features, out_features=out_features,
        batch_tile=batch_tile))

    def forward(x):
        return impl(x, w_slab, b_slab)

    return forward


def init_linear(key, in_features, out_features):
    """Mimics PyTorch nn.Linear default init (uniform +-1/sqrt(fan_in)).
    Returns weight already transposed to [in, out] and bias as [out]."""
    kw, kb = jax.random.split(key)
    bound = 1.0 / jnp.sqrt(jnp.float32(in_features))
    w_t = jax.random.uniform(kw, (in_features, out_features), jnp.float32,
                             minval=-bound, maxval=bound)
    b = jax.random.uniform(kb, (out_features,), jnp.float32,
                           minval=-bound, maxval=bound)
    return w_t, b


def reference_forward(x, params):
    """Pure-JAX reference of the same forward pass (for the sanity check)."""
    h = x.astype(jnp.float32)
    n = len(params)
    for i, (w, b) in enumerate(params):
        h = h @ w.astype(jnp.float32) + b.reshape(1, -1)
        if i < n - 1:
            h = _elu(h)
    return h


if __name__ == "__main__":
    # Small shapes consistent with the module's forward: windows of the CPU
    # utilization series; window (feature) size 8, reconstructing 8 values.
    batch = 16
    input_size = 8
    output_size = 8

    key = jax.random.PRNGKey(0)
    k_x, k1, k2, k3, k11, k22, kout = jax.random.split(key, 7)

    x = jax.random.normal(k_x, (batch, input_size), jnp.float32)

    layer_dims = [
        (input_size, H1_SIZE),    # L1
        (H1_SIZE, H2_SIZE),       # L2
        (H2_SIZE, H3_SIZE),       # L3
        (H3_SIZE, H11_SIZE),      # L11
        (H11_SIZE, H22_SIZE),     # L22
        (H22_SIZE, output_size),  # Lout
    ]
    keys = [k1, k2, k3, k11, k22, kout]
    params = [init_linear(k, fin, fout) for k, (fin, fout) in zip(keys, layer_dims)]

    ref = reference_forward(x, params)

    # f32 MXU path: matches the reference to float32 precision.
    forward = build_mlp_forward(params)          # pack + jit once
    out = jax.block_until_ready(forward(x))
    assert out.shape == (batch, output_size)
    assert jnp.allclose(out, ref, atol=1e-5, rtol=1e-5), "f32 path mismatch vs JAX reference"

    # Optional bf16 MXU path (native MXU operand format); loose tolerance.
    forward_bf16 = build_mlp_forward(params, use_bf16=True)
    out_bf16 = jax.block_until_ready(forward_bf16(x))
    assert out_bf16.shape == (batch, output_size)
    assert jnp.allclose(out_bf16, ref, atol=5e-2, rtol=5e-2), "bf16 path outside loose tolerance"

    print("KERNEL_OK")
</pallas_src>

<mosaic_0001>
module attributes {stable_mosaic.version = 11 : i64} {
  func.func @mlp_kernel(%arg0: i32, %arg1: memref<8x8xf32, #tpu.memory_space<vmem>>, %arg2: memref<6x128x128xf32, #tpu.memory_space<vmem>>, %arg3: memref<8x128xf32, #tpu.memory_space<vmem>>, %arg4: memref<8x128xf32, #tpu.memory_space<vmem>>) attributes {dimension_semantics = [#tpu.dimension_semantics<parallel>], iteration_bounds = array<i64: 2>, scalar_prefetch = 0 : i64, scratch_operands = 0 : i64, tpu.core_type = #tpu.core_type<tc>, window_params = [{transform_indices = @transform_0, window_bounds = array<i64: 8, 8>}, {pipeline_mode = #tpu.pipeline_mode<synchronous>, transform_indices = @transform_1, window_bounds = array<i64: 6, 128, 128>}, {pipeline_mode = #tpu.pipeline_mode<synchronous>, transform_indices = @transform_2, window_bounds = array<i64: 8, 128>}, {transform_indices = @transform_3, window_bounds = array<i64: 8, 128>}]} {
    %c0 = arith.constant 0 : index
    %c0_0 = arith.constant 0 : index
    %0 = vector.load %arg1[%c0, %c0_0] : memref<8x8xf32, #tpu.memory_space<vmem>>, vector<8x8xf32>
    %c0_1 = arith.constant 0 : index
    %c0_2 = arith.constant 0 : index
    %c0_3 = arith.constant 0 : index
    %1 = vector.load %arg2[%c0_1, %c0_2, %c0_3] : memref<6x128x128xf32, #tpu.memory_space<vmem>>, vector<1x8x128xf32>
    %2 = vector.shape_cast %1 : vector<1x8x128xf32> to vector<8x128xf32>
    %cst = arith.constant dense<0.000000e+00> : vector<8x128xf32>
    %3 = tpu.matmul %0, %2, %cst {dimension_numbers = #tpu.dot_dimension_numbers<[1], [0], [0], [1], [0, 0, 1, 1], [], []>} : vector<8x8xf32>, vector<8x128xf32>, vector<8x128xf32> -> vector<8x128xf32>
    %c0_4 = arith.constant 0 : index
    %c0_5 = arith.constant 0 : index
    %4 = vector.load %arg3[%c0_4, %c0_5] : memref<8x128xf32, #tpu.memory_space<vmem>>, vector<1x128xf32>
    %5 = vector.shape_cast %4 : vector<1x128xf32> to vector<128xf32>
    %6 = vector.shape_cast %5 : vector<128xf32> to vector<1x128xf32>
    %7 = vector.broadcast %6 : vector<1x128xf32> to vector<8x128xf32>
    %8 = arith.addf %3, %7 : vector<8x128xf32>
    %cst_6 = arith.constant 0.000000e+00 : f32
    %9 = vector.broadcast %cst_6 : f32 to vector<8x128xf32>
    %10 = arith.cmpf ogt, %8, %9 : vector<8x128xf32>
    %cst_7 = arith.constant 0.000000e+00 : f32
    %11 = vector.broadcast %cst_7 : f32 to vector<8x128xf32>
    %12 = arith.minimumf %8, %11 : vector<8x128xf32>
    %13 = math.exp %12 : vector<8x128xf32>
    %cst_8 = arith.constant 1.000000e+00 : f32
    %14 = vector.broadcast %cst_8 : f32 to vector<8x128xf32>
    %15 = arith.subf %13, %14 : vector<8x128xf32>
    %cst_9 = arith.constant 5.000000e-01 : f32
    %16 = vector.broadcast %cst_9 : f32 to vector<8x128xf32>
    %17 = arith.mulf %16, %15 : vector<8x128xf32>
    %18 = arith.select %10, %8, %17 : vector<8x128xi1>, vector<8x128xf32>
    %c1 = arith.constant 1 : index
    %c0_10 = arith.constant 0 : index
    %c0_11 = arith.constant 0 : index
    %19 = vector.load %arg2[%c1, %c0_10, %c0_11] : memref<6x128x128xf32, #tpu.memory_space<vmem>>, vector<1x128x128xf32>
    %20 = vector.shape_cast %19 : vector<1x128x128xf32> to vector<128x128xf32>
    %cst_12 = arith.constant dense<0.000000e+00> : vector<8x128xf32>
    %21 = tpu.matmul %18, %20, %cst_12 {dimension_numbers = #tpu.dot_dimension_numbers<[1], [0], [0], [1], [0, 0, 1, 1], [], []>} : vector<8x128xf32>, vector<128x128xf32>, vector<8x128xf32> -> vector<8x128xf32>
    %c1_13 = arith.constant 1 : index
    %c0_14 = arith.constant 0 : index
    %22 = vector.load %arg3[%c1_13, %c0_14] : memref<8x128xf32, #tpu.memory_space<vmem>>, vector<1x128xf32>
    %23 = vector.shape_cast %22 : vector<1x128xf32> to vector<128xf32>
    %24 = vector.shape_cast %23 : vector<128xf32> to vector<1x128xf32>
    %25 = vector.broadcast %24 : vector<1x128xf32> to vector<8x128xf32>
    %26 = arith.addf %21, %25 : vector<8x128xf32>
    %cst_15 = arith.constant 0.000000e+00 : f32
    %27 = vector.broadcast %cst_15 : f32 to vector<8x128xf32>
    %28 = arith.cmpf ogt, %26, %27 : vector<8x128xf32>
    %cst_16 = arith.constant 0.000000e+00 : f32
    %29 = vector.broadcast %cst_16 : f32 to vector<8x128xf32>
    %30 = arith.minimumf %26, %29 : vector<8x128xf32>
    %31 = math.exp %30 : vector<8x128xf32>
    %cst_17 = arith.constant 1.000000e+00 : f32
    %32 = vector.broadcast %cst_17 : f32 to vector<8x128xf32>
    %33 = arith.subf %31, %32 : vector<8x128xf32>
    %cst_18 = arith.constant 5.000000e-01 : f32
    %34 = vector.broadcast %cst_18 : f32 to vector<8x128xf32>
    %35 = arith.mulf %34, %33 : vector<8x128xf32>
    %36 = arith.select %28, %26, %35 : vector<8x128xi1>, vector<8x128xf32>
    %c2 = arith.constant 2 : index
    %c0_19 = arith.constant 0 : index
    %c0_20 = arith.constant 0 : index
    %37 = vector.load %arg2[%c2, %c0_19, %c0_20] : memref<6x128x128xf32, #tpu.memory_space<vmem>>, vector<1x128x128xf32>
    %38 = vector.shape_cast %37 : vector<1x128x128xf32> to vector<128x128xf32>
    %cst_21 = arith.constant dense<0.000000e+00> : vector<8x128xf32>
    %39 = tpu.matmul %36, %38, %cst_21 {dimension_numbers = #tpu.dot_dimension_numbers<[1], [0], [0], [1], [0, 0, 1, 1], [], []>} : vector<8x128xf32>, vector<128x128xf32>, vector<8x128xf32> -> vector<8x128xf32>
    %c2_22 = arith.constant 2 : index
    %c0_23 = arith.constant 0 : index
    %40 = vector.load %arg3[%c2_22, %c0_23] : memref<8x128xf32, #tpu.memory_space<vmem>>, vector<1x128xf32>
    %41 = vector.shape_cast %40 : vector<1x128xf32> to vector<128xf32>
    %42 = vector.shape_cast %41 : vector<128xf32> to vector<1x128xf32>
    %43 = vector.broadcast %42 : vector<1x128xf32> to vector<8x128xf32>
    %44 = arith.addf %39, %43 : vector<8x128xf32>
    %cst_24 = arith.constant 0.000000e+00 : f32
    %45 = vector.broadcast %cst_24 : f32 to vector<8x128xf32>
    %46 = arith.cmpf ogt, %44, %45 : vector<8x128xf32>
    %cst_25 = arith.constant 0.000000e+00 : f32
    %47 = vector.broadcast %cst_25 : f32 to vector<8x128xf32>
    %48 = arith.minimumf %44, %47 : vector<8x128xf32>
    %49 = math.exp %48 : vector<8x128xf32>
    %cst_26 = arith.constant 1.000000e+00 : f32
    %50 = vector.broadcast %cst_26 : f32 to vector<8x128xf32>
    %51 = arith.subf %49, %50 : vector<8x128xf32>
    %cst_27 = arith.constant 5.000000e-01 : f32
    %52 = vector.broadcast %cst_27 : f32 to vector<8x128xf32>
    %53 = arith.mulf %52, %51 : vector<8x128xf32>
    %54 = arith.select %46, %44, %53 : vector<8x128xi1>, vector<8x128xf32>
    %c3 = arith.constant 3 : index
    %c0_28 = arith.constant 0 : index
    %c0_29 = arith.constant 0 : index
    %55 = vector.load %arg2[%c3, %c0_28, %c0_29] : memref<6x128x128xf32, #tpu.memory_space<vmem>>, vector<1x128x128xf32>
    %56 = vector.shape_cast %55 : vector<1x128x128xf32> to vector<128x128xf32>
    %cst_30 = arith.constant dense<0.000000e+00> : vector<8x128xf32>
    %57 = tpu.matmul %54, %56, %cst_30 {dimension_numbers = #tpu.dot_dimension_numbers<[1], [0], [0], [1], [0, 0, 1, 1], [], []>} : vector<8x128xf32>, vector<128x128xf32>, vector<8x128xf32> -> vector<8x128xf32>
    %c3_31 = arith.constant 3 : index
    %c0_32 = arith.constant 0 : index
    %58 = vector.load %arg3[%c3_31, %c0_32] : memref<8x128xf32, #tpu.memory_space<vmem>>, vector<1x128xf32>
    %59 = vector.shape_cast %58 : vector<1x128xf32> to vector<128xf32>
    %60 = vector.shape_cast %59 : vector<128xf32> to vector<1x128xf32>
    %61 = vector.broadcast %60 : vector<1x128xf32> to vector<8x128xf32>
    %62 = arith.addf %57, %61 : vector<8x128xf32>
    %cst_33 = arith.constant 0.000000e+00 : f32
    %63 = vector.broadcast %cst_33 : f32 to vector<8x128xf32>
    %64 = arith.cmpf ogt, %62, %63 : vector<8x128xf32>
    %cst_34 = arith.constant 0.000000e+00 : f32
    %65 = vector.broadcast %cst_34 : f32 to vector<8x128xf32>
    %66 = arith.minimumf %62, %65 : vector<8x128xf32>
    %67 = math.exp %66 : vector<8x128xf32>
    %cst_35 = arith.constant 1.000000e+00 : f32
    %68 = vector.broadcast %cst_35 : f32 to vector<8x128xf32>
    %69 = arith.subf %67, %68 : vector<8x128xf32>
    %cst_36 = arith.constant 5.000000e-01 : f32
    %70 = vector.broadcast %cst_36 : f32 to vector<8x128xf32>
    %71 = arith.mulf %70, %69 : vector<8x128xf32>
    %72 = arith.select %64, %62, %71 : vector<8x128xi1>, vector<8x128xf32>
    %c4 = arith.constant 4 : index
    %c0_37 = arith.constant 0 : index
    %c0_38 = arith.constant 0 : index
    %73 = vector.load %arg2[%c4, %c0_37, %c0_38] : memref<6x128x128xf32, #tpu.memory_space<vmem>>, vector<1x128x128xf32>
    %74 = vector.shape_cast %73 : vector<1x128x128xf32> to vector<128x128xf32>
    %cst_39 = arith.constant dense<0.000000e+00> : vector<8x128xf32>
    %75 = tpu.matmul %72, %74, %cst_39 {dimension_numbers = #tpu.dot_dimension_numbers<[1], [0], [0], [1], [0, 0, 1, 1], [], []>} : vector<8x128xf32>, vector<128x128xf32>, vector<8x128xf32> -> vector<8x128xf32>
    %c4_40 = arith.constant 4 : index
    %c0_41 = arith.constant 0 : index
    %76 = vector.load %arg3[%c4_40, %c0_41] : memref<8x128xf32, #tpu.memory_space<vmem>>, vector<1x128xf32>
    %77 = vector.shape_cast %76 : vector<1x128xf32> to vector<128xf32>
    %78 = vector.shape_cast %77 : vector<128xf32> to vector<1x128xf32>
    %79 = vector.broadcast %78 : vector<1x128xf32> to vector<8x128xf32>
    %80 = arith.addf %75, %79 : vector<8x128xf32>
    %cst_42 = arith.constant 0.000000e+00 : f32
    %81 = vector.broadcast %cst_42 : f32 to vector<8x128xf32>
    %82 = arith.cmpf ogt, %80, %81 : vector<8x128xf32>
    %cst_43 = arith.constant 0.000000e+00 : f32
    %83 = vector.broadcast %cst_43 : f32 to vector<8x128xf32>
    %84 = arith.minimumf %80, %83 : vector<8x128xf32>
    %85 = math.exp %84 : vector<8x128xf32>
    %cst_44 = arith.constant 1.000000e+00 : f32
    %86 = vector.broadcast %cst_44 : f32 to vector<8x128xf32>
    %87 = arith.subf %85, %86 : vector<8x128xf32>
    %cst_45 = arith.constant 5.000000e-01 : f32
    %88 = vector.broadcast %cst_45 : f32 to vector<8x128xf32>
    %89 = arith.mulf %88, %87 : vector<8x128xf32>
    %90 = arith.select %82, %80, %89 : vector<8x128xi1>, vector<8x128xf32>
    %c5 = arith.constant 5 : index
    %c0_46 = arith.constant 0 : index
    %c0_47 = arith.constant 0 : index
    %91 = vector.load %arg2[%c5, %c0_46, %c0_47] : memref<6x128x128xf32, #tpu.memory_space<vmem>>, vector<1x128x128xf32>
    %92 = vector.shape_cast %91 : vector<1x128x128xf32> to vector<128x128xf32>
    %cst_48 = arith.constant dense<0.000000e+00> : vector<8x128xf32>
    %93 = tpu.matmul %90, %92, %cst_48 {dimension_numbers = #tpu.dot_dimension_numbers<[1], [0], [0], [1], [0, 0, 1, 1], [], []>} : vector<8x128xf32>, vector<128x128xf32>, vector<8x128xf32> -> vector<8x128xf32>
    %c5_49 = arith.constant 5 : index
    %c0_50 = arith.constant 0 : index
    %94 = vector.load %arg3[%c5_49, %c0_50] : memref<8x128xf32, #tpu.memory_space<vmem>>, vector<1x128xf32>
    %95 = vector.shape_cast %94 : vector<1x128xf32> to vector<128xf32>
    %96 = vector.shape_cast %95 : vector<128xf32> to vector<1x128xf32>
    %97 = vector.broadcast %96 : vector<1x128xf32> to vector<8x128xf32>
    %98 = arith.addf %93, %97 : vector<8x128xf32>
    %c0_51 = arith.constant 0 : index
    %c0_52 = arith.constant 0 : index
    %99 = vector.load %arg4[%c0_51, %c0_52] : memref<8x128xf32, #tpu.memory_space<vmem>>, vector<8x128xf32>
    tpu.vector_store %arg4[%c0_51, %c0_52], %98 {strides = array<i32>} : memref<8x128xf32, #tpu.memory_space<vmem>>, vector<8x128xf32>,
    return
  }
  func.func @transform_0(%arg0: i32) -> (i32, i32) {
    %c0_i32 = arith.constant 0 : i32
    %c0_i32_0 = arith.constant 0 : i32
    return %arg0, %c0_i32 : i32, i32
  }
  func.func @transform_1(%arg0: i32) -> (i32, i32, i32) {
    %c0_i32 = arith.constant 0 : i32
    %c0_i32_0 = arith.constant 0 : i32
    %c0_i32_1 = arith.constant 0 : i32
    %c0_i32_2 = arith.constant 0 : i32
    return %c0_i32, %c0_i32_0, %c0_i32_1 : i32, i32, i32
  }
  func.func @transform_2(%arg0: i32) -> (i32, i32) {
    %c0_i32 = arith.constant 0 : i32
    %c0_i32_0 = arith.constant 0 : i32
    %c0_i32_1 = arith.constant 0 : i32
    return %c0_i32, %c0_i32_0 : i32, i32
  }
  func.func @transform_3(%arg0: i32) -> (i32, i32) {
    %c0_i32 = arith.constant 0 : i32
    %c0_i32_0 = arith.constant 0 : i32
    return %arg0, %c0_i32 : i32, i32
  }
}

</mosaic_0001>

<bundles_post_ra>
// kernel: _forward_impl.1
= control target key start
LH: loop header
LB: loop body
LE: loop exit
PB: predicated region body
PF: predicated region fallthrough
CT: control target
= control target key end

     0   :  { %8 = vsyncpa [#allocation3], 0  ;;  %s1333_s12 = smov 0   ;;  %s1467_s0 = inlined_call_operand.vmem [shape: f32[16,8], index: 0, kind: input, shape index: {}]   ;;  %s1468_s1 = inlined_call_operand.hbm [shape: f32[6,128,128], index: 1, kind: input, shape index: {}]   ;;  %s1469_s2 = inlined_call_operand.vmem [shape: f32[8,128], index: 2, kind: input, shape index: {}]   ;;  %s1470_s3 = inlined_call_operand.vmem [shape: f32[16,128], index: 3, kind: output, shape index: {}]  }
   0x1 LB: > { %s1339_s13 = sadd.s32 4294967295, %s1305_s12   ;;  %p825_p0 = scmp.ge.s32.totalorder %s1305_s12, 1  ;;  %s1305_s12 = sphi %s1333_s12, %s14_s12  }
   0x2   : > { %p113_p1 = scmp.lt.s32.totalorder %s1305_s12, 3  ;;  %s1307_s14 = smov [#allocation2]  }
   0x3   : > { %s125_s15 = sshll.u32 %s1307_s14, 4  ;;  %p1471_p3 = scmp.eq.s32.totalorder %s1339_s13, 0  ;;  %s126_s15 = int_to_ptr.vmem [resolvable:$true] %s125_s15 }
   0x4   : > { %p1343_p2 = pnand %p825_p0, %p113_p1  ;;  %s1267_s20 = scalar_lea.hbm %s1468_s1, 12288 }
   0x5   : > { %p1268_p6 = scmp.ne.s32.totalorder %s1468_s1, %s1267_s20  ;;  %p1274_p10 = scmp.lt.u32.totalorder %s1267_s20, %s1468_s1 }
   0x6   : > { %s1473_s16 = scalar_select %p1343_p2, 1, 0 }
   0x7   : > { %p1237_p4 = pneg %p1343_p2 }
   0x9   : > { %p1352_p5 = pnand %p1471_p3, %p1237_p4 }
   0xb   : > { %p1269_p7 = pneg %p1352_p5 }
   0xd   : > { %p1270_p8 = pnand %p1269_p7, %p1268_p6 }
   0xf   : > { %p1271_p9 = pneg %p1270_p8 }
  0x11   : > { %p1276_p11 = pnand %p1274_p10, %p1271_p9 }
  0x13   : > { %1279 = shalt.err (!%p1276_p11)
}
  0x14   : > { %s1280_s25 = scalar_lea.vmem %s126_s15, 12288  ;;  %p1288_p1 = scmp.lt.s32.totalorder %s126_s15, %s126_s15 }
  0x15   : > { %p1281_p12 = scmp.ne.s32.totalorder %s126_s15, %s1280_s25  ;;  %p1289_p4 = scmp.lt.s32.totalorder %s1280_s25, %s1280_s25 }
  0x17   : > { %p1283_p13 = pnand %p1281_p12, %p1269_p7  ;;  %p1290_p3 = por %p1289_p4, %p1288_p1 }
  0x19   : > { %p1284_p0 = pneg %p1283_p13 }
  0x1b   : > { %p1291_p2 = pnand %p1290_p3, %p1284_p0 }
  0x1d   : > { %1294 = shalt.err (!%p1291_p2)
}
  0x1e   : > { %s1308_s26 = smov 128   ;;  %s1309_s27 = smov 8  }
  0x1f   : > { %1240 = dma.hbm_to_vmem [thread:$0]  (!%p1352_p5), %s1468_s1, 12288, %s126_s15, [#allocation3], %s1308_s26, %s1308_s26, %s1309_s27  }
  0x20   : > { %p1475_p6 = scmp.ne.s32.totalorder %s1473_s16, 0 }
  0x21   : > { %p1476_p8 = scmp.eq.s32.totalorder (!%p1475_p6), %s1339_s13, 0 }
  0x22   : > { %151 = sbr.rel (%p1475_p6) target bundleno = 1433 (0x599), region = 32 }
  0x29   : > { %1300 = dma.done.wait (%p1476_p8), [#allocation3], 12288   ;;  %p1477_p7 = pmov %p1476_p8 }
  0x2a   : > { %p173_p2 = scmp.lt.s32.totalorder %s1339_s13, 1  ;;  %v1310_v0 = vmov 0.0   ;;  %vm1311_vm0 = vmmov 0   ;;  %v1312_v1 = vmov 0.0|0.0   ;;  %vm188_vm1 = vcmask 64512   ;;  %v182_v2 = vld [vmem:[#allocation2] sm:$0xff] }
  0x2b   : > { %1302 = vsyncadd (%p1477_p7), [#allocation3], 4294955008  ;;  %933 = vmatprep.subr.mxu0 %v1310_v0  ;;  %935 = vmatprep.mubr.msk.f32.mxu0 %vm1311_vm0, %v1310_v0  ;;  %v270_v4 = vld [vmem:[#allocation2 + $0x80] sm:$0xff]  ;;  %v271_v5 = vld [vmem:[#allocation2 + $0x88] sm:$0xff] }
  0x2c   : > { %s1479_s13 = smov (!%p173_p2, %s1339_s13), 1  ;;  %1113 = vmatprep.subr.bf16.mxu1 %v1312_v1  ;;  %970 = vmatprep.mubr.msk.f32.mxu1 %vm1311_vm0, %v1310_v0  ;;  %v272_v6 = vld [vmem:[#allocation2 + $0x90] sm:$0xff]  ;;  %v273_v7 = vld [vmem:[#allocation2 + $0x98] sm:$0xff]  ;;  %v1114_v8 = vpack.c.bf16 %v271_v5, %v270_v4  ;;  %v274_v10 = vld [vmem:[#allocation2 + $0xa0] sm:$0xff] }
  0x2d   : > { %s830_s30 = sshll.u32 %s1479_s13, 3  ;;  %934 = vmatpush3.msra.mxu0 %v182_v2  ;;  %v1117_v9 = vpack.c.bf16 %v273_v7, %v272_v6  ;;  %v275_v11 = vld [vmem:[#allocation2 + $0xa8] sm:$0xff]  ;;  %v276_v13 = vld [vmem:[#allocation2 + $0xb0] sm:$0xff]  ;;  %v277_v14 = vld [vmem:[#allocation2 + $0xb8] sm:$0xff] }
  0x2e   : > { %s176_s6 = scalar_lea.vmem %s1467_s0, %s830_s30  ;;  %1137 = vmatprep.subr.bf16.mxu0 %v1312_v1  ;;  %1115 = vmatpush3.bf16.msra.mxu1 %v1114_v8  ;;  %v1120_v12 = vpack.c.bf16 %v275_v11, %v274_v10  ;;  %v1123_v15 = vpack.c.bf16 %v277_v14, %v276_v13  ;;  %v278_v16 = vld [vmem:[#allocation2 + $0xc0] sm:$0xff]  ;;  %v279_v17 = vld [vmem:[#allocation2 + $0xc8] sm:$0xff]  ;;  %v280_v19 = vld [vmem:[#allocation2 + $0xd0] sm:$0xff]  ;;  %s180_s23 = scalar_lea.vmem %s1470_s3, %s830_s30 }
  0x2f   : > { %v181_v3 = vld [vmem:[%s176_s6] sm:$0xff]  ;;  %1116 = vmatprep.subr.bf16.mxu1 %v1312_v1  ;;  %v1126_v18 = vpack.c.bf16 %v279_v17, %v278_v16  ;;  %v281_v20 = vld [vmem:[#allocation2 + $0xd8] sm:$0xff]  ;;  %v283_v23 = vld [vmem:[#allocation2 + $0xe8] sm:$0xff] }
  0x30   : > { %936 = vmatmul.mubr.msk.f32.vlgmr.msra.gmra.mrb[0].mxu0 %vm188_vm1, %v181_v3  ;;  %v1129_v21 = vpack.c.bf16 %v281_v20, %v280_v19  ;;  %v282_v22 = vld [vmem:[#allocation2 + $0xe0] sm:$0xff]  ;;  %v284_v25 = vld [vmem:[#allocation2 + $0xf0] sm:$0xff]  ;;  %v285_v26 = vld [vmem:[#allocation2 + $0xf8] sm:$0xff] }
  0x31   : > { %1005 = vmatprep.mubr.msk.f32.mxu0 %vm1311_vm0, %v1310_v0  ;;  %v1132_v24 = vpack.c.bf16 %v283_v23, %v282_v22  ;;  %v1135_v27 = vpack.c.bf16 %v285_v26, %v284_v25  ;;  %v369_v28 = vld [vmem:[#allocation2 + $0x100] sm:$0xff]  ;;  %v370_v29 = vld [vmem:[#allocation2 + $0x108] sm:$0xff]  ;;  %v371_v30 = vld [vmem:[#allocation2 + $0x110] sm:$0xff] }
  0x32   : > { %1118 = vmatpush3.bf16.msra.mxu1 %v1117_v9  ;;  %v1138_v31 = vpack.c.bf16 %v370_v29, %v369_v28  ;;  %v372_v32 = vld [vmem:[#allocation2 + $0x118] sm:$0xff]  ;;  %v832_v34 = vld [vmem:[%s1469_s2] ss:$0 sm:$0xff]  ;;  %v374_v45 = vld [vmem:[#allocation2 + $0x128] sm:$0xff] }
  0x33   : > { %1119 = vmatprep.subr.bf16.mxu1 %v1312_v1  ;;  %v1141_v33 = vpack.c.bf16 %v372_v32, %v371_v30  ;;  %v373_v44 = vld [vmem:[#allocation2 + $0x120] sm:$0xff]  ;;  %v375_v47 = vld [vmem:[#allocation2 + $0x130] sm:$0xff]  ;;  %v376_v48 = vld [vmem:[#allocation2 + $0x138] sm:$0xff] }
  0x34   : > { %1139 = vmatpush3.bf16.msra.mxu0 %v1138_v31  ;;  %v1144_v46 = vpack.c.bf16 %v374_v45, %v373_v44  ;;  %v1147_v49 = vpack.c.bf16 %v376_v48, %v375_v47  ;;  %v377_v50 = vld [vmem:[#allocation2 + $0x140] sm:$0xff]  ;;  %v378_v51 = vld [vmem:[#allocation2 + $0x148] sm:$0xff]  ;;  %v379_v53 = vld [vmem:[#allocation2 + $0x150] sm:$0xff] }
  0x35   : > { %1140 = vmatprep.subr.bf16.mxu0 %v1312_v1  ;;  %v1150_v52 = vpack.c.bf16 %v378_v51, %v377_v50  ;;  %v380_v54 = vld [vmem:[#allocation2 + $0x158] sm:$0xff]  ;;  %v381_v56 = vld [vmem:[#allocation2 + $0x160] sm:$0xff]  ;;  %v382_v57 = vld [vmem:[#allocation2 + $0x168] sm:$0xff] }
  0x36   : > { %1121 = vmatpush3.bf16.msra.mxu1 %v1120_v12  ;;  %v1153_v55 = vpack.c.bf16 %v380_v54, %v379_v53  ;;  %v1156_v58 = vpack.c.bf16 %v382_v57, %v381_v56  ;;  %v383_v59 = vld [vmem:[#allocation2 + $0x170] sm:$0xff]  ;;  %v384_v60 = vld [vmem:[#allocation2 + $0x178] sm:$0xff]  ;;  %v468_v62 = vld [vmem:[#allocation2 + $0x180] sm:$0xff] }
  0x37   : > { %1122 = vmatprep.subr.bf16.mxu1 %v1312_v1  ;;  %v1159_v61 = vpack.c.bf16 %v384_v60, %v383_v59  ;;  %v469_v63 = vld [vmem:[#allocation2 + $0x188] sm:$0xff]  ;;  %v470_v2 = vld [vmem:[#allocation2 + $0x190] sm:$0xff]  ;;  %v471_v4 = vld [vmem:[#allocation2 + $0x198] sm:$0xff] }
  0x38   : > { %1142 = vmatpush3.bf16.msra.mxu0 %v1141_v33  ;;  %v1162_v3 = vpack.c.bf16 %v469_v63, %v468_v62  ;;  %v1165_v5 = vpack.c.bf16 %v471_v4, %v470_v2  ;;  %v835_v6 = vld [vmem:[%s1469_s2 + $0x1] ss:$0 sm:$0xff]  ;;  %v473_v17 = vld [vmem:[#allocation2 + $0x1a8] sm:$0xff]  ;;  %v474_v19 = vld [vmem:[#allocation2 + $0x1b0] sm:$0xff] }
  0x39   : > { %1143 = vmatprep.subr.bf16.mxu0 %v1312_v1  ;;  %v472_v16 = vld [vmem:[#allocation2 + $0x1a0] sm:$0xff]  ;;  %v475_v20 = vld [vmem:[#allocation2 + $0x1b8] sm:$0xff]  ;;  %v477_v23 = vld [vmem:[#allocation2 + $0x1c8] sm:$0xff] }
  0x3a   : > { %1124 = vmatpush3.bf16.msra.mxu1 %v1123_v15  ;;  %v476_v22 = vld [vmem:[#allocation2 + $0x1c0] sm:$0xff]  ;;  %v478_v25 = vld [vmem:[#allocation2 + $0x1d0] sm:$0xff]  ;;  %v479_v26 = vld [vmem:[#allocation2 + $0x1d8] sm:$0xff] }
  0x3b   : > { %1125 = vmatprep.subr.bf16.mxu1 %v1312_v1  ;;  %v480_v28 = vld [vmem:[#allocation2 + $0x1e0] sm:$0xff]  ;;  %v481_v29 = vld [vmem:[#allocation2 + $0x1e8] sm:$0xff]  ;;  %v482_v31 = vld [vmem:[#allocation2 + $0x1f0] sm:$0xff] }
  0x3c   : > { %1145 = vmatpush3.bf16.msra.mxu0 %v1144_v46  ;;  %v1180_v30 = vpack.c.bf16 %v481_v29, %v480_v28  ;;  %v483_v32 = vld [vmem:[#allocation2 + $0x1f8] sm:$0xff]  ;;  %v571_v50 = vld [vmem:[#allocation2 + $0x220] sm:$0xff]  ;;  %v572_v51 = vld [vmem:[#allocation2 + $0x228] sm:$0xff] }
  0x3d   : > { %1146 = vmatprep.subr.bf16.mxu0 %v1312_v1  ;;  %v1183_v33 = vpack.c.bf16 %v483_v32, %v482_v31  ;;  %v573_v53 = vld [vmem:[#allocation2 + $0x230] sm:$0xff]  ;;  %v574_v54 = vld [vmem:[#allocation2 + $0x238] sm:$0xff]  ;;  %v575_v56 = vld [vmem:[#allocation2 + $0x240] sm:$0xff] }
  0x3e   : > { %1127 = vmatpush3.bf16.msra.mxu1 %v1126_v18  ;;  %v1168_v18 = vpack.c.bf16 %v473_v17, %v472_v16  ;;  %v576_v57 = vld [vmem:[#allocation2 + $0x248] sm:$0xff]  ;;  %v577_v59 = vld [vmem:[#allocation2 + $0x250] sm:$0xff]  ;;  %v578_v60 = vld [vmem:[#allocation2 + $0x258] sm:$0xff] }
  0x3f   : > { %1128 = vmatprep.subr.bf16.mxu1 %v1312_v1  ;;  %v580_v62 = vld [vmem:[#allocation2 + $0x268] sm:$0xff]  ;;  %v581_v2 = vld [vmem:[#allocation2 + $0x270] sm:$0xff]  ;;  %v677_v31 = vld [vmem:[#allocation2 + $0x2d8] sm:$0xff] }
  0x40   : > { %1148 = vmatpush3.bf16.msra.mxu0 %v1147_v49  ;;  %v675_v28 = vld [vmem:[#allocation2 + $0x2c8] sm:$0xff] }
  0x41   : > { %1149 = vmatprep.subr.bf16.mxu0 %v1312_v1 }
  0x42   : > { %1130 = vmatpush3.bf16.msra.mxu1 %v1129_v21  ;;  %v1171_v21 = vpack.c.bf16 %v475_v20, %v474_v19 }
  0x43   : > { %1131 = vmatprep.subr.bf16.mxu1 %v1312_v1 }
  0x44   : > { %1151 = vmatpush3.bf16.msra.mxu0 %v1150_v52  ;;  %v1192_v52 = vpack.c.bf16 %v572_v51, %v571_v50 }
  0x45   : > { %1152 = vmatprep.subr.bf16.mxu0 %v1312_v1 }
  0x46   : > { %1133 = vmatpush3.bf16.msra.mxu1 %v1132_v24  ;;  %v1174_v24 = vpack.c.bf16 %v477_v23, %v476_v22  ;;  %v671_v22 = vld [vmem:[#allocation2 + $0x2a8] sm:$0xff] }
  0x47   : > { %1134 = vmatprep.subr.bf16.mxu1 %v1312_v1 }
  0x48   : > { %1154 = vmatpush3.bf16.msra.mxu0 %v1153_v55  ;;  %v1195_v55 = vpack.c.bf16 %v574_v54, %v573_v53 }
  0x49   : > { %1155 = vmatprep.subr.bf16.mxu0 %v1312_v1 }
  0x4a   : > { %1136 = vmatpush3.bf16.msra.mxu1 %v1135_v27  ;;  %v1177_v27 = vpack.c.bf16 %v479_v26, %v478_v25  ;;  %v673_v25 = vld [vmem:[#allocation2 + $0x2b8] sm:$0xff] }
  0x4b   : > { %1161 = vmatprep.subr.bf16.mxu1 %v1312_v1 }
  0x4c   : > { %1157 = vmatpush3.bf16.msra.mxu0 %v1156_v58  ;;  %v1198_v58 = vpack.c.bf16 %v576_v57, %v575_v56 }
  0x4d   : > { %1158 = vmatprep.subr.bf16.mxu0 %v1312_v1 }
  0x50   : > { %1160 = vmatpush3.bf16.msra.mxu0 %v1159_v61  ;;  %v1201_v61 = vpack.c.bf16 %v578_v60, %v577_v59 }
  0x51   : > { %1185 = vmatprep.subr.bf16.mxu0 %v1312_v1 }
 0x103   : > { %v258_v35 = vpop.f32.mrb[0].mxu0 }
 0x104   : > { %v259_v36 = vadd.f32 %v832_v34, %v258_v35  ;;  %v937_v37 = vpop.f32.mrb[1].mxu0  ;;  %v567_v34 = vld [vmem:[#allocation2 + $0x200] sm:$0xff]  ;;  %v568_v35 = vld [vmem:[#allocation2 + $0x208] sm:$0xff] }
 0x105   : > { %v1186_v37 = vpack.c.bf16 %v568_v35, %v567_v34  ;;  %v679_v34 = vld [vmem:[#allocation2 + $0x2e8] sm:$0xff] }
 0x106   : > { %v263_v38 = vmin.f32 %v259_v36, 0.0  ;;  %vm262_vm2 = vcmp.gt.f32.partialorder %v259_v36, 0.0 }
 0x108   : > { %v264_v39 = vmul.f32 1.442695, %v263_v38  ;;  %v570_v38 = vld [vmem:[#allocation2 + $0x218] sm:$0xff] }
 0x10a   : > { %1257 = vpow2.f32 %v264_v39 }
 0x114   : > { %v1258_v40 = vpop.eup %1257 }
 0x115   : > { %v834_v41 = vadd.f32 -1.0, %v1258_v40  ;;  %v837_v40 = vld [vmem:[%s1469_s2 + $0x2] ss:$0 sm:$0xff] }
 0x117   : > { %v267_v42 = vmul.f32 0.5, %v834_v41 }
 0x119   : > { %v268_v43 = vsel %vm262_vm2, %v259_v36, %v267_v42  ;;  %v569_v36 = vld [vmem:[#allocation2 + $0x210] sm:$0xff] }
 0x11a   : > { %971 = vmatmul.mubr.f32.vlgmr.msra.gmra.mrb[0].mxu1 %v268_v43  ;;  %v1189_v39 = vpack.c.bf16 %v570_v38, %v569_v36  ;;  %v680_v36 = vld [vmem:[#allocation2 + $0x2f0] sm:$0xff] }
 0x11b   : > { %1040 = vmatprep.mubr.msk.f32.mxu1 %vm1311_vm0, %v1310_v0  ;;  %1163 = vmatpush3.bf16.msra.mxu1 %v1162_v3  ;;  %v582_v3 = vld [vmem:[#allocation2 + $0x278] sm:$0xff] }
 0x11c   : > { %1164 = vmatprep.subr.bf16.mxu1 %v1312_v1  ;;  %v1207_v4 = vpack.c.bf16 %v582_v3, %v581_v2 }
 0x11f   : > { %1166 = vmatpush3.bf16.msra.mxu1 %v1165_v5  ;;  %v666_v5 = vld [vmem:[#allocation2 + $0x280] sm:$0xff] }
 0x120   : > { %1167 = vmatprep.subr.bf16.mxu1 %v1312_v1 }
 0x123   : > { %1169 = vmatpush3.bf16.msra.mxu1 %v1168_v18 }
 0x124   : > { %1170 = vmatprep.subr.bf16.mxu1 %v1312_v1 }
 0x127   : > { %1172 = vmatpush3.bf16.msra.mxu1 %v1171_v21  ;;  %v670_v21 = vld [vmem:[#allocation2 + $0x2a0] sm:$0xff] }
 0x128   : > { %1173 = vmatprep.subr.bf16.mxu1 %v1312_v1  ;;  %v1216_v23 = vpack.c.bf16 %v671_v22, %v670_v21 }
 0x12b   : > { %1175 = vmatpush3.bf16.msra.mxu1 %v1174_v24  ;;  %v672_v24 = vld [vmem:[#allocation2 + $0x2b0] sm:$0xff] }
 0x12c   : > { %1176 = vmatprep.subr.bf16.mxu1 %v1312_v1  ;;  %v1219_v26 = vpack.c.bf16 %v673_v25, %v672_v24 }
 0x12f   : > { %1178 = vmatpush3.bf16.msra.mxu1 %v1177_v27  ;;  %v674_v27 = vld [vmem:[#allocation2 + $0x2c0] sm:$0xff] }
 0x130   : > { %1179 = vmatprep.subr.bf16.mxu1 %v1312_v1  ;;  %v1222_v29 = vpack.c.bf16 %v675_v28, %v674_v27 }
 0x133   : > { %1181 = vmatpush3.bf16.msra.mxu1 %v1180_v30  ;;  %v676_v30 = vld [vmem:[#allocation2 + $0x2d0] sm:$0xff] }
 0x134   : > { %1182 = vmatprep.subr.bf16.mxu1 %v1312_v1  ;;  %v1225_v32 = vpack.c.bf16 %v677_v31, %v676_v30 }
 0x137   : > { %1184 = vmatpush3.bf16.msra.mxu1 %v1183_v33  ;;  %v678_v33 = vld [vmem:[#allocation2 + $0x2e0] sm:$0xff] }
 0x138   : > { %1209 = vmatprep.subr.bf16.mxu1 %v1312_v1  ;;  %v1228_v35 = vpack.c.bf16 %v679_v34, %v678_v33 }
 0x1ed   : > { %v357_v7 = vpop.f32.mrb[0].mxu1 }
 0x1ee   : > { %v358_v8 = vadd.f32 %v835_v6, %v357_v7  ;;  %v972_v9 = vpop.f32.mrb[1].mxu1  ;;  %v667_v6 = vld [vmem:[#allocation2 + $0x288] sm:$0xff]  ;;  %v668_v7 = vld [vmem:[#allocation2 + $0x290] sm:$0xff] }
 0x1ef   : > { %v669_v9 = vld [vmem:[#allocation2 + $0x298] sm:$0xff] }
 0x1f0   : > { %v362_v10 = vmin.f32 %v358_v8, 0.0  ;;  %vm361_vm3 = vcmp.gt.f32.partialorder %v358_v8, 0.0 }
 0x1f2   : > { %v363_v11 = vmul.f32 1.442695, %v362_v10  ;;  %v1213_v10 = vpack.c.bf16 %v669_v9, %v668_v7 }
 0x1f4   : > { %1259 = vpow2.f32 %v363_v11  ;;  %v839_v11 = vld [vmem:[%s1469_s2 + $0x3] ss:$0 sm:$0xff] }
 0x1fe   : > { %v1260_v12 = vpop.eup %1259 }
 0x1ff   : > { %v836_v13 = vadd.f32 -1.0, %v1260_v12 }
 0x201   : > { %v366_v14 = vmul.f32 0.5, %v836_v13 }
 0x203   : > { %v367_v15 = vsel %vm361_vm3, %v358_v8, %v366_v14  ;;  %v1210_v8 = vpack.c.bf16 %v667_v6, %v666_v5 }
 0x204   : > { %1006 = vmatmul.mubr.f32.vlgmr.msra.gmra.mrb[2].mxu0 %v367_v15 }
 0x205   : > { %1075 = vmatprep.mubr.msk.f32.mxu0 %vm1311_vm0, %v1310_v0  ;;  %1187 = vmatpush3.bf16.msra.mxu0 %v1186_v37  ;;  %v681_v37 = vld [vmem:[#allocation2 + $0x2f8] sm:$0xff] }
 0x206   : > { %1188 = vmatprep.subr.bf16.mxu0 %v1312_v1  ;;  %v1231_v38 = vpack.c.bf16 %v681_v37, %v680_v36 }
 0x209   : > { %1190 = vmatpush3.bf16.msra.mxu0 %v1189_v39  ;;  %v841_v39 = vld [vmem:[%s1469_s2 + $0x4] ss:$0 sm:$0xff] }
 0x20a   : > { %1191 = vmatprep.subr.bf16.mxu0 %v1312_v1 }
 0x20d   : > { %1193 = vmatpush3.bf16.msra.mxu0 %v1192_v52 }
 0x20e   : > { %1194 = vmatprep.subr.bf16.mxu0 %v1312_v1 }
 0x211   : > { %1196 = vmatpush3.bf16.msra.mxu0 %v1195_v55 }
 0x212   : > { %1197 = vmatprep.subr.bf16.mxu0 %v1312_v1 }
 0x215   : > { %1199 = vmatpush3.bf16.msra.mxu0 %v1198_v58 }
 0x216   : > { %1200 = vmatprep.subr.bf16.mxu0 %v1312_v1 }
 0x219   : > { %1202 = vmatpush3.bf16.msra.mxu0 %v1201_v61 }
 0x21a   : > { %1203 = vmatprep.subr.bf16.mxu0 %v1312_v1 }
 0x2d7   : > { %v456_v41 = vpop.f32.mrb[2].mxu0 }
 0x2d8   : > { %v457_v42 = vadd.f32 %v837_v40, %v456_v41  ;;  %v1007_v43 = vpop.f32.mrb[3].mxu0 }
 0x2da   : > { %v461_v44 = vmin.f32 %v457_v42, 0.0  ;;  %vm460_vm4 = vcmp.gt.f32.partialorder %v457_v42, 0.0 }
 0x2dc   : > { %v462_v45 = vmul.f32 1.442695, %v461_v44 }
 0x2de   : > { %1261 = vpow2.f32 %v462_v45 }
 0x2e8   : > { %v1262_v46 = vpop.eup %1261 }
 0x2e9   : > { %v838_v47 = vadd.f32 -1.0, %v1262_v46 }
 0x2eb   : > { %v465_v48 = vmul.f32 0.5, %v838_v47 }
 0x2ed   : > { %v466_v49 = vsel %vm460_vm4, %v457_v42, %v465_v48 }
 0x2ee   : > { %1041 = vmatmul.mubr.f32.vlgmr.msra.gmra.mrb[2].mxu1 %v466_v49 }
 0x2ef   : > { %1110 = vmatprep.mubr.msk.f32.mxu1 %vm1311_vm0, %v1310_v0  ;;  %v579_v0 = vld [vmem:[#allocation2 + $0x260] sm:$0xff]  ;;  %1211 = vmatpush3.bf16.msra.mxu1 %v1210_v8 }
 0x2f0   : > { %v1204_v63 = vpack.c.bf16 %v580_v62, %v579_v0  ;;  %1212 = vmatprep.subr.bf16.mxu1 %v1312_v1 }
 0x2f2   : > { %1205 = vmatpush3.bf16.msra.mxu0 %v1204_v63 }
 0x2f3   : > { %1206 = vmatprep.subr.bf16.mxu0 %v1312_v1  ;;  %1214 = vmatpush3.bf16.msra.mxu1 %v1213_v10 }
 0x2f4   : > { %1215 = vmatprep.subr.bf16.mxu1 %v1312_v1 }
 0x2f6   : > { %1208 = vmatpush3.bf16.msra.mxu0 %v1207_v4 }
 0x2f7   : > { %1217 = vmatpush3.bf16.msra.mxu1 %v1216_v23 }
 0x2f8   : > { %1218 = vmatprep.subr.bf16.mxu1 %v1312_v1 }
 0x2fb   : > { %1220 = vmatpush3.bf16.msra.mxu1 %v1219_v26 }
 0x2fc   : > { %1221 = vmatprep.subr.bf16.mxu1 %v1312_v1 }
 0x2ff   : > { %1223 = vmatpush3.bf16.msra.mxu1 %v1222_v29 }
 0x300   : > { %1224 = vmatprep.subr.bf16.mxu1 %v1312_v1 }
 0x303   : > { %1226 = vmatpush3.bf16.msra.mxu1 %v1225_v32 }
 0x304   : > { %1227 = vmatprep.subr.bf16.mxu1 %v1312_v1 }
 0x307   : > { %1229 = vmatpush3.bf16.msra.mxu1 %v1228_v35 }
 0x308   : > { %1230 = vmatprep.subr.bf16.mxu1 %v1312_v1  ;;  %v843_v1 = vld [vmem:[%s1469_s2 + $0x5] ss:$0 sm:$0xff] }
 0x30b   : > { %1232 = vmatpush3.bf16.msra.mxu1 %v1231_v38 }
 0x3c1   : > { %v555_v12 = vpop.f32.mrb[2].mxu1 }
 0x3c2   : > { %v556_v13 = vadd.f32 %v839_v11, %v555_v12  ;;  %v1042_v14 = vpop.f32.mrb[3].mxu1 }
 0x3c4   : > { %v560_v15 = vmin.f32 %v556_v13, 0.0  ;;  %vm559_vm5 = vcmp.gt.f32.partialorder %v556_v13, 0.0 }
 0x3c6   : > { %v561_v16 = vmul.f32 1.442695, %v560_v15 }
 0x3c8   : > { %1263 = vpow2.f32 %v561_v16 }
 0x3d2   : > { %v1264_v17 = vpop.eup %1263 }
 0x3d3   : > { %v840_v18 = vadd.f32 -1.0, %v1264_v17 }
 0x3d5   : > { %v564_v19 = vmul.f32 0.5, %v840_v18 }
 0x3d7   : > { %v565_v20 = vsel %vm559_vm5, %v556_v13, %v564_v19 }
 0x3d8   : > { %1076 = vmatmul.mubr.f32.vlgmr.msra.gmra.mrb[4].mxu0 %v565_v20 }
 0x4ab   : > { %v654_v40 = vpop.f32.mrb[4].mxu0 }
 0x4ac   : > { %v655_v41 = vadd.f32 %v841_v39, %v654_v40  ;;  %v1077_v42 = vpop.f32.mrb[5].mxu0 }
 0x4ae   : > { %v659_v43 = vmin.f32 %v655_v41, 0.0  ;;  %vm658_vm6 = vcmp.gt.f32.partialorder %v655_v41, 0.0 }
 0x4b0   : > { %v660_v44 = vmul.f32 1.442695, %v659_v43 }
 0x4b2   : > { %1265 = vpow2.f32 %v660_v44 }
 0x4bc   : > { %v1266_v45 = vpop.eup %1265 }
 0x4bd   : > { %v842_v46 = vadd.f32 -1.0, %v1266_v45 }
 0x4bf   : > { %v663_v47 = vmul.f32 0.5, %v842_v46 }
 0x4c1   : > { %v664_v48 = vsel %vm658_vm6, %v655_v41, %v663_v47 }
 0x4c2   : > { %1111 = vmatmul.mubr.f32.vlgmr.msra.gmra.mrb[4].mxu1 %v664_v48 }
 0x595   : > { %v753_v49 = vpop.f32.mrb[4].mxu1 }
 0x596   : > { %v754_v50 = vadd.f32 %v843_v1, %v753_v49  ;;  %v1112_v51 = vpop.f32.mrb[5].mxu1 }
 0x598   : > { %757 = vst [vmem:[%s180_s23] sm:$0xff] %v754_v50 }
 0x599 PF: > { %s14_s12 = sadd.s32 1, %s1305_s12  }
 0x59a   : > { %p11_p3 = scmp.ge.s32.totalorder %s14_s12, 4  }
 0x59c   :  { %13 = sbr.rel (!%p11_p3) target bundleno = 1 (0x1), region = 72 }
 0x5a3   :  { %777 = vsyncpa [#allocation3], 1 }
 0x5a4   :  { %779 = vsyncpa [#allocation3 + $0x1], 1 }

</bundles_post_ra>
